<compile_context>
chip_gen: v7x
topology: tpu7x:2x2x1
jax: 0.10.0
libtpu: 0.0.40
codegen_flags: <defaults>
</compile_context>

<pallas_src>
import functools

import jax
import jax.numpy as jnp
from jax import lax
from jax.experimental import pallas as pl
from jax.experimental.pallas import tpu as pltpu

BN_EPS = 1e-5
NEG_SLOPE = 0.2        # PyG GATConv LeakyReLU default
MASK_BIAS = -1e30


def _elu(x):
    return jnp.where(x > 0, x, jnp.expm1(jnp.minimum(x, 0.0)))


# --------------------- kernel A: conv1 node-wise projection ---------------------
def _proj1_kernel(x_ref, w1_ref, adst1_ref, xw1b_ref, dst1_ref):
    xw1 = jnp.dot(x_ref[...], w1_ref[...],
                  preferred_element_type=jnp.float32)              # [T, H*C] f32
    xw1b_ref[...] = xw1.astype(jnp.bfloat16)                       # bf16 copy for consumers
    # per-node dst-side attention logits, all heads at once (full f32 precision)
    dst1_ref[...] = jnp.dot(xw1, adst1_ref[...],
                            preferred_element_type=jnp.float32)    # [T, H]


# ---------- kernel B: conv1 attention + bias + BN1 + ELU + conv2 linear ----------
def _conv1_kernel(heads, ch, xw1b_ref, dst1_ref, bias_ref, asrc1t_ref,
                  b1_ref, bn1s_ref, bn1b_ref, w2_ref, adst2_ref,
                  xw2b_ref, dst2_ref, x1_acc):
    xw1_b = xw1b_ref[...]                                          # [N, H*C] bf16 (all srcs)
    dst1 = dst1_ref[...]                                           # [T, H]  f32 (this tile)
    bias = bias_ref[...].astype(jnp.float32)                       # [T, N]  additive mask
    # all-head src-side logits in one bf16 matmul (block-diagonal att weights)
    src_t = lax.dot_general(asrc1t_ref[...], xw1_b,
                            (((1,), (1,)), ((), ())),
                            preferred_element_type=jnp.float32)    # [H, N]
    for h in range(heads):
        c0 = h * ch
        e = dst1[:, h:h + 1] + src_t[h:h + 1, :]                   # [T, N]
        e = jnp.where(e > 0, e, NEG_SLOPE * e) + bias              # LeakyReLU + mask
        m = jnp.max(e, axis=-1, keepdims=True)
        p = jnp.exp(e - m)                                         # unnormalised numerators
        denom = jnp.sum(p, axis=-1, keepdims=True)                 # >= 1 (self-loops present)
        agg = jnp.dot(p.astype(jnp.bfloat16), xw1_b[:, c0:c0 + ch],
                      preferred_element_type=jnp.float32)          # [T, C]
        x1_acc[:, c0:c0 + ch] = agg * pl.reciprocal(denom, approx=True)
    x1 = x1_acc[...] + b1_ref[...]                                 # conv1 bias
    x1 = _elu(x1 * bn1s_ref[...] + bn1b_ref[...])                  # folded BN1 + ELU
    xw2 = jnp.dot(x1, w2_ref[...],
                  preferred_element_type=jnp.float32)              # conv2 linear, [T, C]
    xw2b_ref[...] = xw2.astype(jnp.bfloat16)
    # per-node conv2 dst-side logit (full f32 precision), streamed to kernel C
    dst2_ref[...] = jnp.dot(xw2, adst2_ref[...],
                            preferred_element_type=jnp.float32)    # [T, 1]


# ------------- kernel C: conv2 attention + bias + BN2 + ELU + MLP head -------------
def _conv2_mlp_kernel(xw2b_ref, dst2_ref, bias_ref, x0_ref, asrc2t_ref,
                      b2_ref, bn2s_ref, bn2b_ref,
                      w3a_ref, w3b_ref, b3_ref, w4_ref, b4_ref, out_ref):
    xw2_b = xw2b_ref[...]                                          # [N, C] bf16 (all srcs)
    bias = bias_ref[...].astype(jnp.float32)                       # [T, N]
    src_t = lax.dot_general(asrc2t_ref[...], xw2_b,
                            (((1,), (1,)), ((), ())),
                            preferred_element_type=jnp.float32)    # [1, N]
    e = dst2_ref[...] + src_t                                      # [T, N]
    e = jnp.where(e > 0, e, NEG_SLOPE * e) + bias
    m = jnp.max(e, axis=-1, keepdims=True)
    p = jnp.exp(e - m)
    denom = jnp.sum(p, axis=-1, keepdims=True)
    agg = jnp.dot(p.astype(jnp.bfloat16), xw2_b,
                  preferred_element_type=jnp.float32)              # [T, C]
    x2 = agg * pl.reciprocal(denom, approx=True) + b2_ref[...]
    x2 = _elu(x2 * bn2s_ref[...] + bn2b_ref[...])                  # folded BN2 + ELU
    # MLP on concat([x2, x0]) folded into a split first-layer matmul
    hmid = (jnp.dot(x2, w3a_ref[...], preferred_element_type=jnp.float32)
            + jnp.dot(x0_ref[...], w3b_ref[...], preferred_element_type=jnp.float32)
            + b3_ref[...])
    hmid = jnp.maximum(hmid, 0.0)                                  # ReLU (dropout = identity)
    # lane-dense output (W4/b4 zero-padded to 128 columns); wrapper slices col 0
    out_ref[...] = jnp.dot(hmid, w4_ref[...],
                           preferred_element_type=jnp.float32) + b4_ref[...]


# ------------------------------ parameters ------------------------------
def init_params(key, in_channels, hidden_channels, heads=8, mlp_hidden=64):
    """Raw (PyTorch-equivalent) eval-mode parameters, incl. BN running stats."""
    C, H = hidden_channels, heads
    f32 = jnp.float32
    ks = jax.random.split(key, 10)

    def glorot(k, shape):
        s = jnp.sqrt(6.0 / (shape[0] + shape[-1]))
        return jax.random.uniform(k, shape, f32, -s, s)

    return dict(
        w1=glorot(ks[0], (in_channels, H * C)),
        att_src1=glorot(ks[1], (H, C)), att_dst1=glorot(ks[2], (H, C)),
        b1=jnp.zeros((H * C,), f32),
        bn1_gamma=jnp.ones((H * C,), f32), bn1_beta=jnp.zeros((H * C,), f32),
        bn1_mean=jnp.zeros((H * C,), f32), bn1_var=jnp.ones((H * C,), f32),
        w2=glorot(ks[3], (H * C, C)),
        att_src2=glorot(ks[4], (1, C)), att_dst2=glorot(ks[5], (1, C)),
        b2=jnp.zeros((C,), f32),
        bn2_gamma=jnp.ones((C,), f32), bn2_beta=jnp.zeros((C,), f32),
        bn2_mean=jnp.zeros((C,), f32), bn2_var=jnp.ones((C,), f32),
        w3=glorot(ks[6], (C + in_channels, mlp_hidden)),
        b3=jax.random.uniform(ks[7], (mlp_hidden,), f32, -0.1, 0.1),
        w4=glorot(ks[8], (mlp_hidden, 1)),
        b4=jax.random.uniform(ks[9], (1,), f32, -0.1, 0.1),
    )


def _block_diag_att(att):
    """att: [H, C] -> [H, H*C] with row h holding att[h] at columns h*C:(h+1)*C."""
    H, C = att.shape
    return (jnp.eye(H, dtype=att.dtype)[:, :, None] * att[:, None, :]).reshape(H, H * C)


def pack_params(p):
    """Fold BN stats, build block-diagonal attention matrices, split/pad MLP weights."""
    f32 = jnp.float32
    C = p["w2"].shape[1]
    mlp_hidden = p["w4"].shape[0]
    asrc1_t = _block_diag_att(p["att_src1"]).astype(jnp.bfloat16)   # [H, H*C] bf16
    adst1 = _block_diag_att(p["att_dst1"]).T                        # [H*C, H] f32
    asrc2_t = p["att_src2"].astype(jnp.bfloat16)                    # [1, C]  bf16
    adst2 = p["att_dst2"].T                                         # [C, 1]  f32
    bn1s = p["bn1_gamma"] / jnp.sqrt(p["bn1_var"] + BN_EPS)
    bn1b = p["bn1_beta"] - p["bn1_mean"] * bn1s
    bn2s = p["bn2_gamma"] / jnp.sqrt(p["bn2_var"] + BN_EPS)
    bn2b = p["bn2_beta"] - p["bn2_mean"] * bn2s
    w3a, w3b = p["w3"][:C, :], p["w3"][C:, :]                        # [x2 | x0] split
    w4p = jnp.zeros((mlp_hidden, 128), f32).at[:, 0:1].set(p["w4"])
    b4p = jnp.zeros((1, 128), f32).at[0, 0].set(p["b4"][0])
    row = lambda v: v.reshape(1, -1).astype(f32)
    return dict(
        w1=p["w1"], adst1=adst1, asrc1_t=asrc1_t, b1=row(p["b1"]),
        bn1s=row(bn1s), bn1b=row(bn1b), w2=p["w2"],
        adst2=adst2, asrc2_t=asrc2_t, b2=row(p["b2"]),
        bn2s=row(bn2s), bn2b=row(bn2b),
        w3a=w3a, w3b=w3b, b3=row(p["b3"]), w4p=w4p, b4p=b4p,
    )


# ------------------------------ forward ------------------------------
def _pick_tile(n):
    # prefer 128 (vreg/MXU & bf16-sublane friendly), then smaller power-of-two tiles
    for t in (128, 64, 32, 16, 8):
        if n % t == 0:
            return t
    return n          # fall back to a single full block


def gatnet_forward(x, edge_index, packed):
    """x: [N, Fin] float32 node features; edge_index: [2, E] int32 (src, dst)."""
    N, fin = x.shape
    HC = packed["w1"].shape[1]
    H = packed["adst1"].shape[1]
    C = packed["w2"].shape[1]
    mh = packed["w3a"].shape[1]
    x = x.astype(jnp.float32)
    tile = _pick_tile(N)
    grid = (N // tile,)
    cparams = pltpu.CompilerParams(dimension_semantics=("parallel",),
                                   vmem_limit_bytes=64 * 1024 * 1024)

    # dense additive attention bias bias[dst, src] (0 on edges / self-loops, -1e30 otherwise),
    # stored bf16; duplicate edges collapse to a single edge.
    adj = jnp.zeros((N, N), jnp.float32).at[edge_index[1], edge_index[0]].set(1.0)
    adj = adj + jnp.eye(N, dtype=jnp.float32)
    bias = jnp.where(adj > 0, 0.0, MASK_BIAS).astype(jnp.bfloat16)

    def full(shape):
        return pl.BlockSpec(shape, lambda t: (0, 0))

    def rows(last):
        return pl.BlockSpec((tile, last), lambda t: (t, 0))

    # --- A: conv1 node projection (+ dst-side logits), tiled over nodes ---
    xw1b, dst1 = pl.pallas_call(
        _proj1_kernel,
        out_shape=(jax.ShapeDtypeStruct((N, HC), jnp.bfloat16),
                   jax.ShapeDtypeStruct((N, H), jnp.float32)),
        grid=grid,
        in_specs=[rows(fin), full((fin, HC)), full((HC, H))],
        out_specs=(pl.BlockSpec((tile, HC), lambda t: (t, 0)),
                   pl.BlockSpec((tile, H), lambda t: (t, 0))),
        compiler_params=cparams,
    )(x, packed["w1"], packed["adst1"])

    # --- B: conv1 attention + BN1 + ELU + conv2 linear, tiled over dst nodes ---
    xw2b, dst2 = pl.pallas_call(
        functools.partial(_conv1_kernel, H, C),
        out_shape=(jax.ShapeDtypeStruct((N, C), jnp.bfloat16),
                   jax.ShapeDtypeStruct((N, 1), jnp.float32)),
        grid=grid,
        in_specs=[full((N, HC)), rows(H), rows(N),
                  full((H, HC)),
                  full((1, HC)), full((1, HC)), full((1, HC)),
                  full((HC, C)), full((C, 1))],
        out_specs=(pl.BlockSpec((tile, C), lambda t: (t, 0)),
                   pl.BlockSpec((tile, 1), lambda t: (t, 0))),
        scratch_shapes=[pltpu.VMEM((tile, HC), jnp.float32)],
        compiler_params=cparams,
    )(xw1b, dst1, bias, packed["asrc1_t"],
      packed["b1"], packed["bn1s"], packed["bn1b"], packed["w2"], packed["adst2"])

    # --- C: conv2 attention + BN2 + ELU + MLP head, tiled over dst nodes ---
    out = pl.pallas_call(
        _conv2_mlp_kernel,
        out_shape=jax.ShapeDtypeStruct((N, 128), jnp.float32),
        grid=grid,
        in_specs=[full((N, C)), rows(1), rows(N), rows(fin),
                  full((1, C)),
                  full((1, C)), full((1, C)), full((1, C)),
                  full((C, mh)), full((fin, mh)), full((1, mh)),
                  full((mh, 128)), full((1, 128))],
        out_specs=pl.BlockSpec((tile, 128), lambda t: (t, 0)),
        compiler_params=cparams,
    )(xw2b, dst2, bias, x, packed["asrc2_t"],
      packed["b2"], packed["bn2s"], packed["bn2b"],
      packed["w3a"], packed["w3b"], packed["b3"], packed["w4p"], packed["b4p"])

    return out[:, 0]      # matches torch .squeeze()


if __name__ == "__main__":
    N, IN_CH, HID, HEADS, E = 256, 8, 16, 8, 1024

    key = jax.random.PRNGKey(0)
    kx, ke1, ke2, kp = jax.random.split(key, 4)

    x = jax.random.normal(kx, (N, IN_CH), jnp.float32)
    src = jax.random.randint(ke1, (E,), 0, N, jnp.int32)
    dst = jax.random.randint(ke2, (E,), 0, N, jnp.int32)
    edge_index = jnp.stack([src, dst], axis=0)

    raw = init_params(kp, IN_CH, HID, heads=HEADS, mlp_hidden=64)
    packed = pack_params(raw)

    out = gatnet_forward(x, edge_index, packed)
    out = jax.block_until_ready(out)
    assert out.shape == (N,)
    assert bool(jnp.all(jnp.isfinite(out)))
    print("KERNEL_OK")
</pallas_src>

<mosaic_0001>
module attributes {stable_mosaic.version = 11 : i64} {
  func.func @_proj1_kernel(%arg0: i32, %arg1: memref<128x8xf32, #tpu.memory_space<vmem>>, %arg2: memref<8x128xf32, #tpu.memory_space<vmem>>, %arg3: memref<128x8xf32, #tpu.memory_space<vmem>>, %arg4: memref<128x128xbf16, #tpu.memory_space<vmem>>, %arg5: memref<128x8xf32, #tpu.memory_space<vmem>>) attributes {dimension_semantics = [#tpu.dimension_semantics<parallel>], iteration_bounds = array<i64: 2>, scalar_prefetch = 0 : i64, scratch_operands = 0 : i64, tpu.core_type = #tpu.core_type<tc>, window_params = [{transform_indices = @transform_0, window_bounds = array<i64: 128, 8>}, {pipeline_mode = #tpu.pipeline_mode<synchronous>, transform_indices = @transform_1, window_bounds = array<i64: 8, 128>}, {pipeline_mode = #tpu.pipeline_mode<synchronous>, transform_indices = @transform_2, window_bounds = array<i64: 128, 8>}, {transform_indices = @transform_3, window_bounds = array<i64: 128, 128>}, {transform_indices = @transform_4, window_bounds = array<i64: 128, 8>}]} {
    %c0 = arith.constant 0 : index
    %c0_0 = arith.constant 0 : index
    %0 = vector.load %arg1[%c0, %c0_0] : memref<128x8xf32, #tpu.memory_space<vmem>>, vector<128x8xf32>
    %c0_1 = arith.constant 0 : index
    %c0_2 = arith.constant 0 : index
    %1 = vector.load %arg2[%c0_1, %c0_2] : memref<8x128xf32, #tpu.memory_space<vmem>>, vector<8x128xf32>
    %cst = arith.constant dense<0.000000e+00> : vector<128x128xf32>
    %2 = tpu.matmul %0, %1, %cst {dimension_numbers = #tpu.dot_dimension_numbers<[1], [0], [0], [1], [0, 0, 1, 1], [], []>} : vector<128x8xf32>, vector<8x128xf32>, vector<128x128xf32> -> vector<128x128xf32>
    %3 = arith.truncf %2 : vector<128x128xf32> to vector<128x128xbf16>
    %c0_3 = arith.constant 0 : index
    %c0_4 = arith.constant 0 : index
    %4 = vector.load %arg4[%c0_3, %c0_4] : memref<128x128xbf16, #tpu.memory_space<vmem>>, vector<128x128xbf16>
    tpu.vector_store %arg4[%c0_3, %c0_4], %3 {strides = array<i32>} : memref<128x128xbf16, #tpu.memory_space<vmem>>, vector<128x128xbf16>,
    %c0_5 = arith.constant 0 : index
    %c0_6 = arith.constant 0 : index
    %5 = vector.load %arg3[%c0_5, %c0_6] : memref<128x8xf32, #tpu.memory_space<vmem>>, vector<128x8xf32>
    %cst_7 = arith.constant dense<0.000000e+00> : vector<128x8xf32>
    %6 = tpu.matmul %2, %5, %cst_7 {dimension_numbers = #tpu.dot_dimension_numbers<[1], [0], [0], [1], [0, 0, 1, 1], [], []>} : vector<128x128xf32>, vector<128x8xf32>, vector<128x8xf32> -> vector<128x8xf32>
    %c0_8 = arith.constant 0 : index
    %c0_9 = arith.constant 0 : index
    %7 = vector.load %arg5[%c0_8, %c0_9] : memref<128x8xf32, #tpu.memory_space<vmem>>, vector<128x8xf32>
    tpu.vector_store %arg5[%c0_8, %c0_9], %6 {strides = array<i32>} : memref<128x8xf32, #tpu.memory_space<vmem>>, vector<128x8xf32>,
    return
  }
  func.func @transform_0(%arg0: i32) -> (i32, i32) {
    %c0_i32 = arith.constant 0 : i32
    %c0_i32_0 = arith.constant 0 : i32
    return %arg0, %c0_i32 : i32, i32
  }
  func.func @transform_1(%arg0: i32) -> (i32, i32) {
    %c0_i32 = arith.constant 0 : i32
    %c0_i32_0 = arith.constant 0 : i32
    %c0_i32_1 = arith.constant 0 : i32
    return %c0_i32, %c0_i32_0 : i32, i32
  }
  func.func @transform_2(%arg0: i32) -> (i32, i32) {
    %c0_i32 = arith.constant 0 : i32
    %c0_i32_0 = arith.constant 0 : i32
    %c0_i32_1 = arith.constant 0 : i32
    return %c0_i32, %c0_i32_0 : i32, i32
  }
  func.func @transform_3(%arg0: i32) -> (i32, i32) {
    %c0_i32 = arith.constant 0 : i32
    %c0_i32_0 = arith.constant 0 : i32
    return %arg0, %c0_i32 : i32, i32
  }
  func.func @transform_4(%arg0: i32) -> (i32, i32) {
    %c0_i32 = arith.constant 0 : i32
    %c0_i32_0 = arith.constant 0 : i32
    return %arg0, %c0_i32 : i32, i32
  }
}

</mosaic_0001>

<bundles_post_ra>
// kernel: tpu_custom_call.1
= control target key start
LH: loop header
LB: loop body
LE: loop exit
PB: predicated region body
PF: predicated region fallthrough
CT: control target
= control target key end

     0   :  { %s1841_s0 = inlined_call_operand.hbm [shape: f32[256,8], index: 0, kind: input, shape index: {}]   ;;  %s1842_s1 = inlined_call_operand.hbm [shape: f32[8,128], index: 1, kind: input, shape index: {}]   ;;  %s1843_s2 = inlined_call_operand.hbm [shape: f32[128,8], index: 2, kind: input, shape index: {}]   ;;  %s1844_s3 = inlined_call_operand.hbm [shape: bf16[256,128], index: 3, kind: output, shape index: {0}]   ;;  %s1845_s4 = inlined_call_operand.hbm [shape: f32[256,8], index: 4, kind: output, shape index: {1}]  }
   0x1   :  { %1851 = sst [smem:[#allocation15_spill]] %s1842_s1 }
   0x2   :  { %10 = vsyncpa [#allocation3], 0 }
   0x3   :  { %12 = vsyncpa [#allocation3 + $0x1], 0 }
   0x4   :  { %13 = vsyncpa [#allocation6], 0 }
   0x5   :  { %14 = vsyncpa [#allocation4], 0 }
   0x6   :  { %16 = vsyncpa [#allocation4 + $0x1], 0 }
   0x7   :  { %17 = vsyncpa [#allocation10], 0 }
   0x8   :  { %19 = vsyncpa [#allocation10 + $0x1], 0  ;;  %s1487_s15 = smov 0   ;;  %s1489_s16 = smov 0  }
   0x9   :  { %s1491_s17 = smov 0   ;;  %s1493_s18 = smov 0  }
   0xa LB: > { %s1508_s19 = sadd.s32 4294967295, %s1449_s18   ;;  %s884_s20 = sadd.s32 4294967294, %s1449_s18   ;;  %s1449_s18 = sphi %s1493_s18, %s1872_s18   ;;  %s1445_s17 = sphi %s1491_s17, %s1871_s17   ;;  %s1441_s16 = sphi %s1489_s16, %s1870_s16   ;;  %s1437_s15 = sphi %s1487_s15, %s1869_s15  }
   0xb   : > { %s1512_s21 = sadd.s32 1, %s1449_s18   ;;  %s32_s22 = sadd.s32 1, %s1445_s17 }
   0xc   : > { %s29_s23 = ssub.s32 %s1449_s18, %s1512_s21  ;;  %p39_p0 = scmp.ne.s32.totalorder %s1445_s17, %s1441_s16 }
   0xd   : > { %p30_p1 = scmp.eq.s32.totalorder %s29_s23, 0  ;;  %p40_p2 = scmp.eq.s32.totalorder %s1449_s18, 0 }
   0xe   : > { %p45_p3 = scmp.ne.s32.totalorder %s1441_s16, %s1437_s15  ;;  %p1846_p4 = scmp.eq.s32.totalorder %s1508_s19, 0 }
   0xf   : > { %s1524_s24 = scalar_select %p30_p1, %s1445_s17, %s32_s22  }
  0x10   : > { %p1526_p5 = por %p40_p2, %p39_p0  ;;  %p1532_p6 = por %p1846_p4, %p45_p3 }
  0x11   : > { %p111_p7 = scmp.eq.s32.totalorder %s1508_s19, 1  ;;  %p117_p8 = scmp.eq.s32.totalorder %s884_s20, 1 }
  0x12   : > { %s1853_s26 = scalar_select %p1532_p6, 1, 0 }
  0x13   : > { %p885_p9 = scmp.ge.s32.totalorder %s1449_s18, 1  ;;  %p150_p10 = scmp.lt.s32.totalorder %s1449_s18, 3 }
  0x14   : > { %p1539_p11 = por %p111_p7, %p39_p0  ;;  %p1543_p12 = por %p117_p8, %p45_p3 }
  0x15   : > { %p1547_p13 = pnand %p885_p9, %p150_p10  ;;  %s1451_s30 = smov [#allocation5]  }
  0x16   : > { %s1854_s27 = scalar_select %p1539_p11, 1, 0 }
  0x17   : > { %s1855_s28 = scalar_select %p1543_p12, 1, 0 }
  0x18   : > { %s1856_s29 = scalar_select %p1547_p13, 1, 0 }
  0x19   : > { %p1197_p2 = pneg %p1547_p13  ;;  %s163_s5 = sshll.u32 %s1451_s30, 4  ;;  %s164_s5 = int_to_ptr.vmem [resolvable:$true] %s163_s5 }
  0x1a   : > { %p1217_p4 = scmp.lt.s32.totalorder %s1449_s18, 2  ;;  %p1857_p0 = scmp.eq.s32.totalorder %s1508_s19, 0 }
  0x1b   : > { %s1452_s8 = smov [#allocation7]   ;;  %s1860_s1 = sld [smem:[#allocation15_spill]] }
  0x1c   : > { %p1557_p7 = pnand %p1197_p2, %p1857_p0  ;;  %p1563_p3 = pnand %p1217_p4, %p1526_p5 }
  0x1d   : > { %s173_s9 = sshll.u32 %s1452_s8, 4  ;;  %s1567_s9 = int_to_ptr.vmem [resolvable:$true] %s173_s9 }
  0x1e   : > { %s1859_s7 = scalar_select %p1563_p3, 1, 0 }
  0x1f   : > { %p1263_p9 = pneg %p1557_p7 }
  0x21   : > { %s1261_s12 = scalar_lea.hbm %s1860_s1, 128 }
  0x22   : > { %p1262_p8 = scmp.ne.s32.totalorder %s1860_s1, %s1261_s12  ;;  %p1268_p10 = scmp.lt.u32.totalorder %s1261_s12, %s1860_s1 }
  0x24   : > { %p1264_p4 = pnand %p1263_p9, %p1262_p8 }
  0x26   : > { %p1265_p5 = pneg %p1264_p4 }
  0x28   : > { %p1270_p2 = pnand %p1268_p10, %p1265_p5 }
  0x2a   : > { %1273 = shalt.err (!%p1270_p2)
}
  0x2b   : > { %s1274_s23 = scalar_lea.vmem %s164_s5, 128  ;;  %p1282_p11 = scmp.lt.s32.totalorder %s164_s5, %s164_s5 }
  0x2c   : > { %p1275_p0 = scmp.ne.s32.totalorder %s164_s5, %s1274_s23  ;;  %p1283_p6 = scmp.lt.s32.totalorder %s1274_s23, %s1274_s23 }
  0x2e   : > { %p1277_p1 = pnand %p1275_p0, %p1263_p9  ;;  %p1284_p13 = por %p1283_p6, %p1282_p11 }
  0x30   : > { %p1278_p12 = pneg %p1277_p1 }
  0x32   : > { %p1285_p3 = pnand %p1284_p13, %p1278_p12 }
  0x34   : > { %1288 = shalt.err (!%p1285_p3)
}
  0x35   : > { %1200 = dma.hbm_to_vmem [thread:$0]  (!%p1557_p7), %s1860_s1, 128, %s164_s5, [#allocation6]  }
  0x36   : > { %s187_s8 = sand.u32 1, %s1445_s17   ;;  %s1289_s12 = scalar_lea.hbm %s1843_s2, 2048 }
  0x37   : > { %p1290_p1 = scmp.ne.s32.totalorder %s1843_s2, %s1289_s12  ;;  %p1296_p12 = scmp.lt.u32.totalorder %s1289_s12, %s1843_s2 }
  0x39   : > { %p1292_p6 = pnand %p1290_p1, %p1263_p9 }
  0x3b   : > { %p1293_p11 = pneg %p1292_p6 }
  0x3d   : > { %p1298_p13 = pnand %p1296_p12, %p1293_p11 }
  0x3f   : > { %1301 = shalt.err (!%p1298_p13)
}
  0x40   : > { %s1302_s5 = scalar_lea.vmem %s1567_s9, 2048  ;;  %p1310_p5 = scmp.lt.s32.totalorder %s1567_s9, %s1567_s9 }
  0x41   : > { %p1303_p3 = scmp.ne.s32.totalorder %s1567_s9, %s1302_s5  ;;  %p1311_p10 = scmp.lt.s32.totalorder %s1302_s5, %s1302_s5 }
  0x43   : > { %p1305_p8 = pnand %p1303_p3, %p1263_p9  ;;  %p1312_p2 = por %p1311_p10, %p1310_p5 }
  0x45   : > { %p1306_p4 = pneg %p1305_p8 }
  0x47   : > { %p1313_p0 = pnand %p1312_p2, %p1306_p4 }
  0x49   : > { %1316 = shalt.err (!%p1313_p0)
}
  0x4a   : > { %s1453_s23 = smov 128   ;;  %s1454_s25 = smov 8  }
  0x4b   : > { %1203 = dma.hbm_to_vmem [thread:$0]  (!%p1557_p7), %s1843_s2, 2048, %s1567_s9, [#allocation6], %s1453_s23, %s1453_s23, %s1454_s25  }
  0x4c   : > { %s889_s11 = sshll.u32 %s187_s8, 7  ;;  %s938_s12 = sshll.u32 %s1449_s18, 11 }
  0x4d   : > { %s1624_s20 = scalar_lea.hbm %s1841_s0, %s938_s12  ;;  %s191_s22 = scalar_lea.vmem [#allocation2], %s889_s11 }
  0x4e   : > { %s198_s6 = sshll.u32 %s191_s22, 4  ;;  %s1628_s5 = scalar_lea.sflag [#allocation3], %s187_s8  ;;  %s1626_s6 = int_to_ptr.vmem [resolvable:$true] %s198_s6 }
  0x4f   : > { %s1317_s1 = scalar_lea.hbm %s1624_s20, 2048  ;;  %p1861_p7 = scmp.ne.s32.totalorder %s1859_s7, 0 }
  0x50   : > { %p1318_p9 = scmp.ne.s32.totalorder %s1624_s20, %s1317_s1  ;;  %s1322_s10 = scalar_lea.hbm %s1841_s0, 4096 }
  0x51   : > { %p1319_p1 = pneg %p1861_p7  ;;  %p1323_p12 = scmp.lt.u32.totalorder %s1624_s20, %s1841_s0 }
  0x52   : > { %p1324_p13 = scmp.lt.u32.totalorder %s1322_s10, %s1317_s1  ;;  %p1326_p8 = scmp.lt.u32.totalorder %s1317_s1, %s1624_s20 }
  0x53   : > { %p1320_p6 = pnand %p1319_p1, %p1318_p9 }
  0x54   : > { %p1325_p3 = por %p1324_p13, %p1323_p12 }
  0x55   : > { %p1321_p11 = pneg %p1320_p6 }
  0x56   : > { %p1327_p4 = por %p1326_p8, %p1325_p3 }
  0x58   : > { %p1328_p5 = pnand %p1327_p4, %p1321_p11 }
  0x5a   : > { %1331 = shalt.err (!%p1328_p5)
}
  0x5b   : > { %s1332_s8 = scalar_lea.vmem %s1626_s6, 2048  ;;  %s1455_s11 = smov [#allocation2]  }
  0x5c   : > { %p1333_p10 = scmp.ne.s32.totalorder %s1626_s6, %s1332_s8  ;;  %s1337_s14 = sshll.u32 %s1455_s11, 4  ;;  %s1338_s14 = int_to_ptr.vmem [resolvable:$false] %s1337_s14 }
  0x5d   : > { %s1339_s22 = scalar_lea.vmem %s1338_s14, 4096  ;;  %p1340_p9 = scmp.lt.s32.totalorder %s1626_s6, %s1338_s14 }
  0x5e   : > { %p1335_p2 = pnand %p1333_p10, %p1319_p1  ;;  %p1341_p6 = scmp.lt.s32.totalorder %s1339_s22, %s1332_s8 }
  0x60   : > { %p1336_p0 = pneg %p1335_p2  ;;  %p1342_p12 = por %p1341_p6, %p1340_p9 }
  0x62   : > { %p1343_p13 = pnand %p1342_p12, %p1336_p0 }
  0x64   : > { %1346 = shalt.err (!%p1343_p13)
}
  0x65   : > { %1207 = dma.hbm_to_vmem [thread:$0]  (!%p1861_p7), %s1624_s20, 2048, %s1626_s6, %s1628_s5, %s1453_s23, %s1453_s23, %s1454_s25  }
  0x66   : > { %p1862_p1 = scmp.ne.s32.totalorder %s1856_s29, 0 }
  0x67   : > { %s1662_s1 = sand.u32 (!%p1862_p1), 1, %s1441_s16   ;;  %p1863_p11 = scmp.ne.s32.totalorder (!%p1862_p1), %s1853_s26, 0 }
  0x68   : > { %210 = sbr.rel (%p1862_p1) target bundleno = 588 (0x24c), region = 32  ;;  %s893_s9 = sshll.u32 (!%p1862_p1), %s1662_s1, 7 }
  0x69   : > { %s213_s30 = scalar_lea.sflag (!%p1862_p1), [#allocation3], %s1662_s1  ;;  %s1668_s7 = scalar_lea.vmem (!%p1862_p1), [#allocation2], %s893_s9 }
  0x6f   : > { %1420 = dma.done.wait (%p1863_p11), %s213_s30, 2048  }
  0x70   : > { %1422 = vsyncadd (%p1863_p11), %s213_s30, 4294965248  ;;  %p1864_p7 = scmp.eq.s32.totalorder %s1508_s19, 0 }
  0x72   : > { %1424 = dma.done.wait (%p1864_p7), [#allocation6], 2176   ;;  %p1865_p3 = pmov %p1864_p7 }
  0x73   : > { %vm274_vm0 = vcmask 64512   ;;  %v273_v0 = vld [vmem:[#allocation5] sm:$0xff]  ;;  %v258_v2 = vld [vmem:[%s1668_s7 + $0x8] sm:$0xff]  ;;  %v259_v3 = vld [vmem:[%s1668_s7 + $0x10] sm:$0xff]  ;;  %s896_s26 = sshll.u32 %s1662_s1, 6  ;;  %s955_s25 = sshll.u32 %s1508_s19, 10 }
  0x74   : > { %1426 = vsyncadd (%p1865_p3), [#allocation6], 4294965120  ;;  %v257_v1 = vld [vmem:[%s1668_s7] sm:$0xff]  ;;  %1053 = vmatprep.subr.mxu0 %v273_v0  ;;  %v260_v4 = vld [vmem:[%s1668_s7 + $0x18] sm:$0xff]  ;;  %s1711_s29 = scalar_lea.vmem [#allocation8], %s896_s26  ;;  %s1728_s5 = scalar_lea.hbm %s1844_s3, %s955_s25 }
  0x75   : > { %1055 = vmatprep.mubr.msk.f32.mxu0 %vm274_vm0, %v257_v1  ;;  %1054 = vmatpush3.msra.mxu0 %v273_v0  ;;  %v261_v5 = vld [vmem:[%s1668_s7 + $0x20] sm:$0xff]  ;;  %v548_v6 = vld [vmem:[#allocation7] sm:$0xff]  ;;  %v549_v7 = vld [vmem:[#allocation7 + $0x8] sm:$0xff]  ;;  %s744_s23 = sshll.u32 %s1711_s29, 4  ;;  %s726_s10 = scalar_lea.sflag [#allocation4], %s1662_s1  ;;  %s1722_s23 = int_to_ptr.vmem [resolvable:$true] %s744_s23 }
  0x76   : > { %1056 = vmatmul.mubr.msk.f32.vlgmr.msra.gmra.mrb[0].mxu0 %vm274_vm0, %v258_v2  ;;  %v550_v8 = vld [vmem:[#allocation7 + $0x10] sm:$0xff]  ;;  %v551_v9 = vld [vmem:[#allocation7 + $0x18] sm:$0xff]  ;;  %v1135_v10 = vpack.c.bf16 %v549_v7, %v548_v6  ;;  %v262_v12 = vld [vmem:[%s1668_s7 + $0x28] sm:$0xff]  ;;  %s1347_s12 = scalar_lea.vmem %s1722_s23, 1024  ;;  %p1866_p4 = scmp.ne.s32.totalorder %s1854_s27, 0 }
  0x77   : > { %1058 = vmatprep.mubr.msk.f32.mxu0 %vm274_vm0, %v259_v3  ;;  %v1139_v11 = vpack.c.bf16 %v551_v9, %v550_v8  ;;  %v552_v13 = vld [vmem:[#allocation7 + $0x20] sm:$0xff]  ;;  %v553_v14 = vld [vmem:[#allocation7 + $0x28] sm:$0xff]  ;;  %v264_v17 = vld [vmem:[%s1668_s7 + $0x38] sm:$0xff]  ;;  %p1348_p8 = scmp.ne.s32.totalorder %s1722_s23, %s1347_s12  ;;  %s1456_s13 = smov [#allocation8]  }
  0x78   : > { %v263_v15 = vld [vmem:[%s1668_s7 + $0x30] sm:$0xff]  ;;  %1136 = vmatprep.subr.bf16.mxu0 %v1135_v10  ;;  %1167 = vmatprep.subr.bf16.mxu1 %v1135_v10  ;;  %v1143_v16 = vpack.c.bf16 %v553_v14, %v552_v13  ;;  %v554_v18 = vld [vmem:[#allocation7 + $0x30] sm:$0xff]  ;;  %v555_v19 = vld [vmem:[#allocation7 + $0x38] sm:$0xff]  ;;  %s1351_s8 = sshll.u32 %s1456_s13, 4  ;;  %s1352_s8 = int_to_ptr.vmem [resolvable:$false] %s1351_s8 }
  0x79   : > { %1138 = vmatpush3.bf16.msra.mxu0 %v1135_v10  ;;  %1175 = vmatpush3.bf16.msra.mxu1 %v1135_v10  ;;  %v265_v20 = vld [vmem:[%s1668_s7 + $0x40] sm:$0xff]  ;;  %v1147_v21 = vpack.c.bf16 %v555_v19, %v554_v18  ;;  %v266_v22 = vld [vmem:[%s1668_s7 + $0x48] sm:$0xff]  ;;  %v557_v24 = vld [vmem:[#allocation7 + $0x48] sm:$0xff]  ;;  %p1349_p5 = pnand %p1348_p8, %p1866_p4  ;;  %s1353_s11 = scalar_lea.vmem %s1352_s8, 2048 }
  0x7a   : > { %1059 = vmatmul.mubr.msk.f32.gmra.mrb[2].mxu0 %vm274_vm0, %v260_v4  ;;  %1140 = vmatprep.subr.bf16.mxu0 %v1139_v11  ;;  %v556_v23 = vld [vmem:[#allocation7 + $0x40] sm:$0xff]  ;;  %v267_v25 = vld [vmem:[%s1668_s7 + $0x50] sm:$0xff]  ;;  %v268_v27 = vld [vmem:[%s1668_s7 + $0x58] sm:$0xff]  ;;  %p1354_p2 = scmp.lt.s32.totalorder %s1722_s23, %s1352_s8  ;;  %p1355_p0 = scmp.lt.s32.totalorder %s1353_s11, %s1347_s12 }
  0x7b   : > { %1061 = vmatprep.mubr.msk.f32.mxu0 %vm274_vm0, %v261_v5  ;;  %1168 = vmatprep.subr.bf16.mxu1 %v1139_v11  ;;  %v1151_v26 = vpack.c.bf16 %v557_v24, %v556_v23  ;;  %v558_v28 = vld [vmem:[#allocation7 + $0x50] sm:$0xff]  ;;  %v559_v29 = vld [vmem:[#allocation7 + $0x58] sm:$0xff]  ;;  %v270_v32 = vld [vmem:[%s1668_s7 + $0x68] sm:$0xff]  ;;  %p1350_p10 = pneg %p1349_p5 }
  0x7c   : > { %v269_v30 = vld [vmem:[%s1668_s7 + $0x60] sm:$0xff]  ;;  %v1155_v31 = vpack.c.bf16 %v559_v29, %v558_v28  ;;  %v560_v33 = vld [vmem:[#allocation7 + $0x60] sm:$0xff]  ;;  %v561_v34 = vld [vmem:[#allocation7 + $0x68] sm:$0xff]  ;;  %p1356_p9 = por %p1355_p0, %p1354_p2 }
  0x7d   : > { %1142 = vmatpush3.bf16.msra.mxu0 %v1139_v11  ;;  %1176 = vmatpush3.bf16.msra.mxu1 %v1139_v11  ;;  %v271_v35 = vld [vmem:[%s1668_s7 + $0x70] sm:$0xff]  ;;  %v1159_v36 = vpack.c.bf16 %v561_v34, %v560_v33  ;;  %v272_v37 = vld [vmem:[%s1668_s7 + $0x78] sm:$0xff]  ;;  %v563_v39 = vld [vmem:[#allocation7 + $0x78] sm:$0xff] }
  0x7e   : > { %1062 = vmatmul.mubr.msk.f32.gmra.mrb[4].mxu0 %vm274_vm0, %v262_v12  ;;  %1144 = vmatprep.subr.bf16.mxu0 %v1143_v16  ;;  %v562_v38 = vld [vmem:[#allocation7 + $0x70] sm:$0xff]  ;;  %p1357_p6 = pnand %p1356_p9, %p1350_p10 }
  0x7f   : > { %1064 = vmatprep.mubr.msk.f32.mxu0 %vm274_vm0, %v263_v15  ;;  %1169 = vmatprep.subr.bf16.mxu1 %v1143_v16  ;;  %v1163_v40 = vpack.c.bf16 %v563_v39, %v562_v38 }
  0x81   : > { %1146 = vmatpush3.bf16.msra.mxu0 %v1143_v16  ;;  %1177 = vmatpush3.bf16.msra.mxu1 %v1143_v16 }
  0x82   : > { %1065 = vmatmul.mubr.msk.f32.gmra.mrb[6].mxu0 %vm274_vm0, %v264_v17  ;;  %1148 = vmatprep.subr.bf16.mxu0 %v1147_v21 }
  0x83   : > { %1067 = vmatprep.mubr.msk.f32.mxu0 %vm274_vm0, %v265_v20  ;;  %1170 = vmatprep.subr.bf16.mxu1 %v1147_v21 }
  0x85   : > { %1150 = vmatpush3.bf16.msra.mxu0 %v1147_v21  ;;  %1178 = vmatpush3.bf16.msra.mxu1 %v1147_v21 }
  0x86   : > { %1068 = vmatmul.mubr.msk.f32.gmra.mrb[8].mxu0 %vm274_vm0, %v266_v22  ;;  %1152 = vmatprep.subr.bf16.mxu0 %v1151_v26 }
  0x87   : > { %1070 = vmatprep.mubr.msk.f32.mxu0 %vm274_vm0, %v267_v25  ;;  %1171 = vmatprep.subr.bf16.mxu1 %v1151_v26 }
  0x89   : > { %1154 = vmatpush3.bf16.msra.mxu0 %v1151_v26  ;;  %1179 = vmatpush3.bf16.msra.mxu1 %v1151_v26 }
  0x8a   : > { %1071 = vmatmul.mubr.msk.f32.gmra.mrb[10].mxu0 %vm274_vm0, %v268_v27  ;;  %1156 = vmatprep.subr.bf16.mxu0 %v1155_v31 }
  0x8b   : > { %1073 = vmatprep.mubr.msk.f32.mxu0 %vm274_vm0, %v269_v30  ;;  %1172 = vmatprep.subr.bf16.mxu1 %v1155_v31 }
  0x8d   : > { %1158 = vmatpush3.bf16.msra.mxu0 %v1155_v31  ;;  %1180 = vmatpush3.bf16.msra.mxu1 %v1155_v31 }
  0x8e   : > { %1074 = vmatmul.mubr.msk.f32.gmra.mrb[12].mxu0 %vm274_vm0, %v270_v32  ;;  %1160 = vmatprep.subr.bf16.mxu0 %v1159_v36 }
  0x8f   : > { %1076 = vmatprep.mubr.msk.f32.mxu0 %vm274_vm0, %v271_v35  ;;  %1173 = vmatprep.subr.bf16.mxu1 %v1159_v36 }
  0x91   : > { %1162 = vmatpush3.bf16.msra.mxu0 %v1159_v36  ;;  %1181 = vmatpush3.bf16.msra.mxu1 %v1159_v36 }
  0x92   : > { %1077 = vmatmul.mubr.msk.f32.gmra.mrb[14].mxu0 %vm274_vm0, %v272_v37  ;;  %1164 = vmatprep.subr.bf16.mxu0 %v1163_v40 }
  0x93   : > { %1174 = vmatprep.subr.bf16.mxu1 %v1163_v40 }
  0x95   : > { %1166 = vmatpush3.bf16.msra.mxu0 %v1163_v40  ;;  %1182 = vmatpush3.bf16.msra.mxu1 %v1163_v40 }
 0x149   : > { %v1057_v41 = vpop.f32.mrb[0].mxu0 }
 0x14a   : > { %v389_v42 = vpop.f32.mrb[1].mxu0 }
 0x14b   : > { %v960_v43 = vpack.c.bf16 %v1057_v41, %v389_v42  ;;  %1111 = vmatprep.mubr.f32.mxu0 %v389_v42 }
 0x14c   : > { %1112 = vmatmul.mubr.f32.vlgmr.msra.gmra.mrb[16].mxu0 %v1057_v41 }
 0x14d   : > { %961 = vst [vmem:[%s1711_s29] sm:$0xff] %v960_v43   ;;  %v1060_v44 = vpop.f32.mrb[2].mxu0 }
 0x14e   : > { %v399_v45 = vpop.f32.mrb[3].mxu0 }
 0x14f   : > { %v965_v46 = vpack.c.bf16 %v1060_v44, %v399_v45  ;;  %1114 = vmatprep.mubr.f32.mxu0 %v399_v45 }
 0x150   : > { %1115 = vmatmul.mubr.f32.gmra.mrb[18].mxu0 %v1060_v44 }
 0x151   : > { %997 = vst [vmem:[%s1711_s29 + $0x8] sm:$0xff] %v965_v46   ;;  %v1063_v47 = vpop.f32.mrb[4].mxu0 }
 0x152   : > { %v409_v48 = vpop.f32.mrb[5].mxu0 }
 0x153   : > { %v970_v49 = vpack.c.bf16 %v1063_v47, %v409_v48  ;;  %1117 = vmatprep.mubr.f32.mxu0 %v409_v48 }
 0x154   : > { %1118 = vmatmul.mubr.f32.gmra.mrb[20].mxu0 %v1063_v47 }
 0x155   : > { %998 = vst [vmem:[%s1711_s29 + $0x10] sm:$0xff] %v970_v49   ;;  %v1066_v50 = vpop.f32.mrb[6].mxu0 }
 0x156   : > { %v419_v51 = vpop.f32.mrb[7].mxu0 }
 0x157   : > { %v975_v52 = vpack.c.bf16 %v1066_v50, %v419_v51  ;;  %1120 = vmatprep.mubr.f32.mxu1 %v419_v51 }
 0x158   : > { %1121 = vmatmul.mubr.f32.vlgmr.msra.gmra.mrb[0].mxu1 %v1066_v50 }
 0x159   : > { %999 = vst [vmem:[%s1711_s29 + $0x18] sm:$0xff] %v975_v52   ;;  %v1069_v53 = vpop.f32.mrb[8].mxu0 }
 0x15a   : > { %v429_v54 = vpop.f32.mrb[9].mxu0 }
 0x15b   : > { %v980_v55 = vpack.c.bf16 %v1069_v53, %v429_v54  ;;  %1123 = vmatprep.mubr.f32.mxu1 %v429_v54 }
 0x15c   : > { %1124 = vmatmul.mubr.f32.gmra.mrb[2].mxu1 %v1069_v53 }
 0x15d   : > { %1000 = vst [vmem:[%s1711_s29 + $0x20] sm:$0xff] %v980_v55   ;;  %v1072_v56 = vpop.f32.mrb[10].mxu0 }
 0x15e   : > { %v439_v57 = vpop.f32.mrb[11].mxu0 }
 0x15f   : > { %v985_v58 = vpack.c.bf16 %v1072_v56, %v439_v57  ;;  %1126 = vmatprep.mubr.f32.mxu1 %v439_v57 }
 0x160   : > { %1127 = vmatmul.mubr.f32.gmra.mrb[4].mxu1 %v1072_v56 }
 0x161   : > { %1001 = vst [vmem:[%s1711_s29 + $0x28] sm:$0xff] %v985_v58   ;;  %v1075_v59 = vpop.f32.mrb[12].mxu0 }
 0x162   : > { %v449_v60 = vpop.f32.mrb[13].mxu0 }
 0x163   : > { %v990_v61 = vpack.c.bf16 %v1075_v59, %v449_v60  ;;  %1129 = vmatprep.mubr.f32.mxu1 %v449_v60 }
 0x164   : > { %1130 = vmatmul.mubr.f32.gmra.mrb[6].mxu1 %v1075_v59 }
 0x165   : > { %1002 = vst [vmem:[%s1711_s29 + $0x30] sm:$0xff] %v990_v61   ;;  %v1078_v62 = vpop.f32.mrb[14].mxu0 }
 0x166   : > { %v459_v63 = vpop.f32.mrb[15].mxu0 }
 0x167   : > { %v995_v0 = vpack.c.bf16 %v1078_v62, %v459_v63  ;;  %1132 = vmatprep.mubr.f32.mxu1 %v459_v63 }
 0x168   : > { %1133 = vmatmul.mubr.f32.gmra.mrb[8].mxu1 %v1078_v62 }
 0x169   : > { %1003 = vst [vmem:[%s1711_s29 + $0x38] sm:$0xff] %v995_v0  }
 0x16a   : > { %1360 = shalt.err (!%p1357_p6)
}
 0x16b   : > { %s1361_s14 = scalar_lea.hbm %s1728_s5, 1024  ;;  %s1365_s7 = scalar_lea.hbm %s1844_s3, 2048 }
 0x16c   : > { %p1362_p12 = scmp.ne.s32.totalorder %s1728_s5, %s1361_s14  ;;  %p1366_p11 = scmp.lt.u32.totalorder %s1728_s5, %s1844_s3 }
 0x16d   : > { %p1367_p7 = scmp.lt.u32.totalorder %s1365_s7, %s1361_s14  ;;  %p1369_p8 = scmp.lt.u32.totalorder %s1361_s14, %s1728_s5 }
 0x16e   : > { %p1363_p13 = pnand %p1362_p12, %p1866_p4 }
 0x16f   : > { %p1368_p3 = por %p1367_p7, %p1366_p11 }
 0x170   : > { %p1364_p1 = pneg %p1363_p13 }
 0x171   : > { %p1370_p5 = por %p1369_p8, %p1368_p3 }
 0x173   : > { %p1371_p10 = pnand %p1370_p5, %p1364_p1 }
 0x175   : > { %1374 = shalt.err (!%p1371_p10)
}
 0x176   : > { %s1457_s25 = smov 64   ;;  %s1458_s20 = smov 4  }
 0x177   : > { %1193 = dma.vmem_to_hbm [thread:$0]  (%p1866_p4), %s1722_s23, 1024, %s1728_s5, %s726_s10, %s1457_s25, %s1457_s25, %s1458_s20  }
 0x178   : > { %s1756_s6 = scalar_lea.vmem [#allocation9], %s893_s9  ;;  %s956_s9 = sshll.u32 %s1508_s19, 11 }
 0x179   : > { %s760_s23 = sshll.u32 %s1756_s6, 4  ;;  %s1791_s12 = scalar_lea.hbm %s1845_s4, %s956_s9  ;;  %s1793_s23 = int_to_ptr.vmem [resolvable:$true] %s760_s23 }
 0x17a   : > { %s731_s19 = scalar_lea.sflag [#allocation10], %s1662_s1  ;;  %s1375_s13 = scalar_lea.vmem %s1793_s23, 2048 }
 0x17b   : > { %p1376_p2 = scmp.ne.s32.totalorder %s1793_s23, %s1375_s13  ;;  %s1459_s8 = smov [#allocation9]  }
 0x17c   : > { %s1379_s11 = sshll.u32 %s1459_s8, 4  ;;  %s1380_s11 = int_to_ptr.vmem [resolvable:$false] %s1379_s11 }
 0x17d   : > { %p1377_p0 = pnand %p1376_p2, %p1866_p4  ;;  %s1381_s14 = scalar_lea.vmem %s1380_s11, 4096 }
 0x17e   : > { %p1382_p6 = scmp.lt.s32.totalorder %s1793_s23, %s1380_s11  ;;  %p1383_p12 = scmp.lt.s32.totalorder %s1381_s14, %s1375_s13 }
 0x17f   : > { %p1378_p9 = pneg %p1377_p0 }
 0x180   : > { %p1384_p13 = por %p1383_p12, %p1382_p6 }
 0x182   : > { %p1385_p1 = pnand %p1384_p13, %p1378_p9 }
 0x21f   : > { %v1113_v1 = vpop.f32.mrb[16].mxu0 }
 0x220   : > { %710 = vst.msk [vmem:[%s1756_s6 + $0x8] sm:$0xff] %vm274_vm0, %v1113_v1  ;;  %v630_v2 = vpop.f32.mrb[17].mxu0 }
 0x221   : > { %709 = vst.msk [vmem:[%s1756_s6] sm:$0xff] %vm274_vm0, %v630_v2 }
 0x223   : > { %v1116_v3 = vpop.f32.mrb[18].mxu0 }
 0x224   : > { %712 = vst.msk [vmem:[%s1756_s6 + $0x18] sm:$0xff] %vm274_vm0, %v1116_v3  ;;  %v640_v4 = vpop.f32.mrb[19].mxu0 }
 0x225   : > { %711 = vst.msk [vmem:[%s1756_s6 + $0x10] sm:$0xff] %vm274_vm0, %v640_v4 }
 0x227   : > { %v1119_v5 = vpop.f32.mrb[20].mxu0 }
 0x228   : > { %714 = vst.msk [vmem:[%s1756_s6 + $0x28] sm:$0xff] %vm274_vm0, %v1119_v5  ;;  %v650_v6 = vpop.f32.mrb[21].mxu0 }
 0x229   : > { %713 = vst.msk [vmem:[%s1756_s6 + $0x20] sm:$0xff] %vm274_vm0, %v650_v6 }
 0x22b   : > { %v1122_v7 = vpop.f32.mrb[0].mxu1 }
 0x22c   : > { %716 = vst.msk [vmem:[%s1756_s6 + $0x38] sm:$0xff] %vm274_vm0, %v1122_v7  ;;  %v660_v8 = vpop.f32.mrb[1].mxu1 }
 0x22d   : > { %715 = vst.msk [vmem:[%s1756_s6 + $0x30] sm:$0xff] %vm274_vm0, %v660_v8 }
 0x22f   : > { %v1125_v9 = vpop.f32.mrb[2].mxu1 }
 0x230   : > { %718 = vst.msk [vmem:[%s1756_s6 + $0x48] sm:$0xff] %vm274_vm0, %v1125_v9  ;;  %v670_v10 = vpop.f32.mrb[3].mxu1 }
 0x231   : > { %717 = vst.msk [vmem:[%s1756_s6 + $0x40] sm:$0xff] %vm274_vm0, %v670_v10 }
 0x233   : > { %v1128_v11 = vpop.f32.mrb[4].mxu1 }
 0x234   : > { %720 = vst.msk [vmem:[%s1756_s6 + $0x58] sm:$0xff] %vm274_vm0, %v1128_v11  ;;  %v680_v12 = vpop.f32.mrb[5].mxu1 }
 0x235   : > { %719 = vst.msk [vmem:[%s1756_s6 + $0x50] sm:$0xff] %vm274_vm0, %v680_v12 }
 0x237   : > { %v1131_v13 = vpop.f32.mrb[6].mxu1 }
 0x238   : > { %722 = vst.msk [vmem:[%s1756_s6 + $0x68] sm:$0xff] %vm274_vm0, %v1131_v13  ;;  %v690_v14 = vpop.f32.mrb[7].mxu1 }
 0x239   : > { %721 = vst.msk [vmem:[%s1756_s6 + $0x60] sm:$0xff] %vm274_vm0, %v690_v14 }
 0x23b   : > { %v1134_v15 = vpop.f32.mrb[8].mxu1 }
 0x23c   : > { %724 = vst.msk [vmem:[%s1756_s6 + $0x78] sm:$0xff] %vm274_vm0, %v1134_v15  ;;  %v700_v16 = vpop.f32.mrb[9].mxu1 }
 0x23d   : > { %723 = vst.msk [vmem:[%s1756_s6 + $0x70] sm:$0xff] %vm274_vm0, %v700_v16 }
 0x23e   : > { %1388 = shalt.err (!%p1385_p1)
}
 0x23f   : > { %s1389_s22 = scalar_lea.hbm %s1791_s12, 2048  ;;  %s1393_s26 = scalar_lea.hbm %s1845_s4, 4096 }
 0x240   : > { %p1390_p11 = scmp.ne.s32.totalorder %s1791_s12, %s1389_s22  ;;  %p1394_p8 = scmp.lt.u32.totalorder %s1791_s12, %s1845_s4 }
 0x241   : > { %p1395_p5 = scmp.lt.u32.totalorder %s1393_s26, %s1389_s22  ;;  %p1397_p2 = scmp.lt.u32.totalorder %s1389_s22, %s1791_s12 }
 0x242   : > { %p1391_p7 = pnand %p1390_p11, %p1866_p4 }
 0x243   : > { %p1396_p10 = por %p1395_p5, %p1394_p8 }
 0x244   : > { %p1392_p3 = pneg %p1391_p7 }
 0x245   : > { %p1398_p0 = por %p1397_p2, %p1396_p10 }
 0x247   : > { %p1399_p9 = pnand %p1398_p0, %p1392_p3 }
 0x249   : > { %1402 = shalt.err (!%p1399_p9)
}
 0x24a   : > { %s1460_s20 = smov 128   ;;  %s1461_s6 = smov 8  }
 0x24b   : > { %1194 = dma.vmem_to_hbm [thread:$0]  (%p1866_p4), %s1793_s23, 2048, %s1791_s12, %s731_s19, %s1460_s20, %s1460_s20, %s1461_s6  }
 0x24c PF: > { %s775_s9 = sand.u32 1, %s1437_s15   ;;  %p1867_p6 = scmp.ne.s32.totalorder %s1855_s28, 0 }
 0x24d   : > { %p1868_p12 = scmp.ge.s32.totalorder %s1449_s18, 2  ;;  %s776_s5 = scalar_lea.sflag [#allocation4], %s775_s9 }
 0x24f   : > { %p1209_p13 = pnand %p1868_p12, %p1867_p6 }
 0x251   : > { %1428 = dma.done.wait (!%p1209_p13), %s776_s5, 1024  }
 0x252   : > { %1430 = vsyncadd (!%p1209_p13), %s776_s5, 4294966272  ;;  %s785_s10 = scalar_lea.sflag [#allocation10], %s775_s9 }
 0x253   : > { %1432 = dma.done.wait (!%p1209_p13), %s785_s10, 2048  }
 0x254   : > { %1434 = vsyncadd (!%p1209_p13), %s785_s10, 4294965248  ;;  %p22_p4 = scmp.ge.s32.totalorder %s1512_s21, 4   ;;  %s1869_s15 = smov %s1441_s16 }
 0x255   : > { %s1870_s16 = smov %s1445_s17  ;;  %s1871_s17 = smov %s1524_s24 }
 0x256   : > { %s1872_s18 = smov %s1512_s21  ;;  %24 = sbr.rel (!%p22_p4) target bundleno = 10 (0xa), region = 102 }
 0x25d   :  { %790 = vsyncpa [#allocation3], 1 }
 0x25e   :  { %792 = vsyncpa [#allocation3 + $0x1], 1 }
 0x25f   :  { %793 = vsyncpa [#allocation6], 1 }
 0x260   :  { %794 = vsyncpa [#allocation4], 1 }
 0x261   :  { %796 = vsyncpa [#allocation4 + $0x1], 1 }
 0x262   :  { %797 = vsyncpa [#allocation10], 1 }
 0x263   :  { %799 = vsyncpa [#allocation10 + $0x1], 1 }

</bundles_post_ra>
